<compile_context>
chip_gen: v5e
topology: v5e:2x2
jax: 0.10.0
libtpu: 0.0.40
codegen_flags: <defaults>
</compile_context>

<pallas_src>
import functools

import jax
import jax.numpy as jnp
from jax import lax
from jax.experimental import pallas as pl
from jax.experimental.pallas import tpu as pltpu


def _conv_kernel(x_ref, col_ref, w_ref, b_ref, o_ref, *, k, pad, w_img,
                 out_rows, hoff):
    """One grid step: 3x3-style conv for one (batch, row-tile).

    x_ref  : (1, 1, Cin, R*W) f32   NCHW row tile, pixels flattened on lanes
    col_ref: (1, out_rows*W) i32    column index (w) of every output pixel
    w_ref  : (Ct, K*K*Cin)   bf16   fused weight, columns ordered (ki, kj, cin)
    b_ref  : (Ct, 1)         f32    bias
    o_ref  : (1, Ct, out_rows*W) bf16  conv output tile (pixels on lanes)
    """
    xt = x_ref[0, 0]                                   # (Cin, R*W) f32
    cin = xt.shape[0]
    p_out = out_rows * w_img
    z0 = pad * w_img + pad                             # lane halo for all K*K taps
    if z0 > 0:
        zeros = jnp.zeros((cin, z0), dtype=xt.dtype)
        # out-of-image / out-of-tile taps read these zeros (no XLA pad pass)
        xt = jnp.concatenate([zeros, xt, zeros], axis=1)
    wcol = col_ref[...]                                # (1, P) i32

    # im2col built in VMEM: K*K statically shifted windows (lane slices of the
    # lane-padded tile), masked where a tap crosses a row edge, concatenated on
    # the SUBLANE dim so the tap reduction is one deep MXU contraction.
    windows = []
    for ki in range(k):
        for kj in range(k):
            dh, dw = ki - pad, kj - pad
            start = z0 + (hoff + dh) * w_img + dw      # static lane offset
            win = xt[:, start:start + p_out]           # (Cin, P)
            if dw != 0:
                valid = (wcol + dw >= 0) & (wcol + dw < w_img)
                win = jnp.where(valid, win, 0.0)
            windows.append(win)
    xcol = jnp.concatenate(windows, axis=0).astype(jnp.bfloat16)   # (K*K*Cin, P)

    # (Ct, D) x (D, P): pixels on the MXU N/lane dim -> lane-dense result/store.
    acc = jnp.dot(w_ref[...], xcol, preferred_element_type=jnp.float32)  # (Ct, P)
    o_ref[0] = (acc + b_ref[...]).astype(o_ref.dtype)


def _vmem_budget_bytes():
    """Generation-aware live-VMEM budget and scoped-VMEM limit."""
    try:
        cap = int(pltpu.get_tpu_info().vmem_capacity_bytes)
    except Exception:  # be conservative (v7x-sized) if the query is unavailable
        cap = 64 * 1024 * 1024
    budget = (cap * 3) // 8            # ~48 MiB on v5e/v6e, ~24 MiB on v7x
    limit = min((cap * 3) // 4, 100 * 1024 * 1024)
    return budget, limit


def _live_bytes(th, halo_rows, w, cin, ct, k, pad):
    """Conservative per-step VMEM footprint (counts im2col intermediates)."""
    kk = k * k
    p = th * w
    rw = (th + halo_rows) * w
    inp = 2 * cin * rw * 4                          # double-buffered input block
    padded = cin * (rw + 2 * (pad * w + pad)) * 4   # in-kernel lane-padded copy
    wins = kk * cin * p * 4                         # K*K masked tap windows
    col = kk * cin * p * (4 + 2)                    # f32 concat + bf16 cast copy
    acc = ct * p * 4                                # f32 matmul result
    out = 2 * ct * p * 2                            # double-buffered bf16 output
    wgt = 2 * (ct * kk * cin * 2 + ct * 4)          # resident weight + bias
    ids = 2 * p * 4                                 # resident column-index row
    return inp + padded + wins + col + acc + out + wgt + ids


def _pick_tile(n, h, w, cin, ct, k, pad, budget):
    """Pick (tile_h, num_tiles).  Prefer the whole image (no halo copy)."""
    def fits(th, halo):
        return _live_bytes(th, halo, w, cin, ct, k, pad) <= budget

    tiled = [d for d in range(h - 1, 0, -1) if h % d == 0 and (d * w) % 128 == 0]
    th, t = (h, 1) if fits(h, 0) else (None, None)
    if th is None:
        for d in tiled:
            if fits(d, 2 * pad):
                th, t = d, h // d
                break
    if th is None:
        # hard guard (review correctness concern): never silently exceed VMEM
        raise NotImplementedError(
            "PixelShufflePack: no 128-lane-aligned H tiling fits the VMEM budget")
    # v7x has 2 TensorCores per chip: prefer >= 2 parallel grid steps.
    if n * t < 2:
        for d in tiled:
            if fits(d, 2 * pad):
                th, t = d, h // d
                break
    return th, t


@functools.partial(jax.jit, static_argnames=("scale_factor", "upsample_kernel"))
def pixel_shuffle_pack(x, weight, bias, *, scale_factor, upsample_kernel):
    """Forward of PixelShufflePack.

    x: (N, Cin, H, W) f32 NCHW.  weight: (Ct, Cin, K, K) OIHW, Ct = Cout*r*r.
    bias: (Ct,).  Returns (N, Cout, H*r, W*r) f32.
    """
    n, cin, h, w = x.shape
    k = upsample_kernel
    r = scale_factor
    ct = weight.shape[0]
    cout = ct // (r * r)
    if k % 2 != 1:
        raise NotImplementedError("even upsample_kernel changes the spatial size")
    pad = (k - 1) // 2
    kk = k * k

    budget, vmem_limit = _vmem_budget_bytes()
    tile_h, num_tiles = _pick_tile(n, h, w, cin, ct, k, pad, budget)

    if num_tiles == 1:
        # Fast path: NO pre-kernel HBM pass.  (N,Cin,H,W) -> (N,1,Cin,H*W) is a
        # free row-major reshape; padding/halos are synthesized in-kernel.
        x_in = x.reshape(n, 1, cin, h * w)
        buf_rows, hoff = h, 0
    else:
        # Tiled path (image too big for one VMEM-resident row slab): materialize
        # overlapping row tiles with a pad-row halo (small duplication).
        # TODO(synk): replace this halo copy with an in-kernel manual DMA
        # (memory_space=pl.ANY + pltpu.make_async_copy) so the tiled path also
        # has no pre-kernel HBM pass.
        xp = jnp.pad(x, ((0, 0), (0, 0), (pad, pad), (0, 0)))
        x_tiles = jnp.stack(
            [xp[:, :, t * tile_h:t * tile_h + tile_h + 2 * pad, :]
             for t in range(num_tiles)],
            axis=1)
        x_in = x_tiles.reshape(n, num_tiles, cin, (tile_h + 2 * pad) * w)
        buf_rows, hoff = tile_h + 2 * pad, pad

    # column index of every output pixel (periodic in W); resident in VMEM.
    col_ids = jnp.tile(jnp.arange(w, dtype=jnp.int32), tile_h)[None, :]

    # weight (Ct,Cin,K,K) -> (Ct, K*K*Cin), column order (ki, kj, cin) matching
    # the in-kernel im2col concat; bf16 operands = MXU fast path, f32 accum.
    w_fused = jnp.transpose(weight, (0, 2, 3, 1)).reshape(ct, kk * cin)
    w_fused = w_fused.astype(jnp.bfloat16)
    b2d = bias.reshape(ct, 1).astype(jnp.float32)

    kernel = functools.partial(
        _conv_kernel, k=k, pad=pad, w_img=w, out_rows=tile_h, hoff=hoff)
    conv_out = pl.pallas_call(
        kernel,
        out_shape=jax.ShapeDtypeStruct((n, ct, h * w), jnp.bfloat16),
        grid=(n, num_tiles),
        in_specs=[
            pl.BlockSpec((1, 1, cin, buf_rows * w), lambda b, t: (b, t, 0, 0)),
            # constant index maps -> resident in VMEM across the whole grid
            pl.BlockSpec((1, tile_h * w), lambda b, t: (0, 0)),
            pl.BlockSpec((ct, kk * cin), lambda b, t: (0, 0)),
            pl.BlockSpec((ct, 1), lambda b, t: (0, 0)),
        ],
        out_specs=pl.BlockSpec((1, ct, tile_h * w), lambda b, t: (b, 0, t)),
        compiler_params=pltpu.CompilerParams(
            dimension_semantics=("parallel", "parallel"),
            vmem_limit_bytes=vmem_limit,
        ),
    )(x_in, col_ids, w_fused, b2d)                   # (N, Ct, H*W) bf16

    # pixel_shuffle: conv channel q = c*r*r + i*r + j -> output (c, h*r+i, w*r+j).
    # Runs on the bf16 intermediate (half the HBM traffic of f32); the f32 cast
    # fuses into the output write.
    # TODO(synk): fusing this interleave into the kernel store needs a
    # lane-granularity (w, j) interleave of the VMEM tile, not expressed here.
    y = conv_out.reshape(n, cout, r, r, h, w)
    y = jnp.transpose(y, (0, 1, 4, 2, 5, 3)).astype(jnp.float32)
    return y.reshape(n, cout, h * r, w * r)


def _reference(x, weight, bias, scale_factor):
    """Pure-JAX reference: lax conv (NCHW/OIHW, f32 HIGHEST) + pixel shuffle."""
    pad = (weight.shape[-1] - 1) // 2
    y = lax.conv_general_dilated(
        x, weight,
        window_strides=(1, 1),
        padding=((pad, pad), (pad, pad)),
        dimension_numbers=("NCHW", "OIHW", "NCHW"),
        precision=lax.Precision.HIGHEST,
    ) + bias[None, :, None, None]
    n, ct, h, w = y.shape
    r = scale_factor
    cout = ct // (r * r)
    y = y.reshape(n, cout, r, r, h, w)
    y = jnp.transpose(y, (0, 1, 4, 2, 5, 3))
    return y.reshape(n, cout, h * r, w * r)


if __name__ == "__main__":
    in_channels = 4
    out_channels = 4
    scale_factor = 2
    upsample_kernel = 3
    N, H, W = 2, 16, 16
    ct = out_channels * scale_factor * scale_factor

    key = jax.random.PRNGKey(0)
    kx, kw = jax.random.split(key)
    x = jax.random.normal(kx, (N, in_channels, H, W), dtype=jnp.float32)

    # kaiming-normal-like init (fan_in = Cin*K*K, gain sqrt(2)), bias = 0,
    # matching default_init_weights(scale=1) semantics.
    fan_in = in_channels * upsample_kernel * upsample_kernel
    std = (2.0 / fan_in) ** 0.5
    weight = std * jax.random.normal(
        kw, (ct, in_channels, upsample_kernel, upsample_kernel), dtype=jnp.float32
    )
    bias = jnp.zeros((ct,), dtype=jnp.float32)

    out = pixel_shuffle_pack(
        x, weight, bias, scale_factor=scale_factor, upsample_kernel=upsample_kernel
    )
    out = jax.block_until_ready(out)

    ref = _reference(x, weight, bias, scale_factor)
    assert out.shape == (N, out_channels, H * scale_factor, W * scale_factor), out.shape
    max_err = float(jnp.max(jnp.abs(out - ref)))
    # bf16 MXU operands + bf16 conv intermediate (f32 accumulation) vs. an f32
    # HIGHEST-precision reference.
    assert jnp.allclose(out, ref, rtol=3e-2, atol=3e-2), max_err
    print("KERNEL_OK")
</pallas_src>

<mosaic_0001>
module attributes {stable_mosaic.version = 11 : i64} {
  func.func @_conv_kernel(%arg0: i32, %arg1: i32, %arg2: memref<1x1x4x256xf32, #tpu.memory_space<vmem>>, %arg3: memref<1x256xi32, #tpu.memory_space<vmem>>, %arg4: memref<16x36xbf16, #tpu.memory_space<vmem>>, %arg5: memref<16x1xf32, #tpu.memory_space<vmem>>, %arg6: memref<1x16x256xbf16, #tpu.memory_space<vmem>>) attributes {dimension_semantics = [#tpu.dimension_semantics<parallel>, #tpu.dimension_semantics<parallel>], iteration_bounds = array<i64: 2, 1>, scalar_prefetch = 0 : i64, scratch_operands = 0 : i64, tpu.core_type = #tpu.core_type<tc>, window_params = [{transform_indices = @transform_0, window_bounds = array<i64: 1, 1, 4, 256>}, {pipeline_mode = #tpu.pipeline_mode<synchronous>, transform_indices = @transform_1, window_bounds = array<i64: 1, 256>}, {pipeline_mode = #tpu.pipeline_mode<synchronous>, transform_indices = @transform_2, window_bounds = array<i64: 16, 36>}, {pipeline_mode = #tpu.pipeline_mode<synchronous>, transform_indices = @transform_3, window_bounds = array<i64: 16, 1>}, {transform_indices = @transform_4, window_bounds = array<i64: 1, 16, 256>}]} {
    %c0 = arith.constant 0 : index
    %c0_0 = arith.constant 0 : index
    %c0_1 = arith.constant 0 : index
    %c0_2 = arith.constant 0 : index
    %0 = vector.load %arg2[%c0, %c0_0, %c0_1, %c0_2] : memref<1x1x4x256xf32, #tpu.memory_space<vmem>>, vector<1x1x4x256xf32>
    %1 = vector.shape_cast %0 : vector<1x1x4x256xf32> to vector<4x256xf32>
    %cst = arith.constant 0.000000e+00 : f32
    %2 = vector.broadcast %cst : f32 to vector<4x17xf32>
    %3 = tpu.concatenate %2, %1, %2 in 1 : vector<4x17xf32>, vector<4x256xf32>, vector<4x17xf32> -> vector<4x290xf32>
    %c0_3 = arith.constant 0 : index
    %c0_4 = arith.constant 0 : index
    %4 = vector.load %arg3[%c0_3, %c0_4] : memref<1x256xi32, #tpu.memory_space<vmem>>, vector<1x256xi32>
    %5 = vector.extract_strided_slice %3 {offsets = [0, 0], sizes = [4, 256], strides = [1, 1]} : vector<4x290xf32> to vector<4x256xf32>
    %c-1_i32 = arith.constant -1 : i32
    %6 = vector.broadcast %c-1_i32 : i32 to vector<1x256xi32>
    %7 = arith.addi %4, %6 : vector<1x256xi32>
    %c0_i32 = arith.constant 0 : i32
    %8 = vector.broadcast %c0_i32 : i32 to vector<1x256xi32>
    %9 = arith.cmpi sge, %7, %8 : vector<1x256xi32>
    %c-1_i32_5 = arith.constant -1 : i32
    %10 = vector.broadcast %c-1_i32_5 : i32 to vector<1x256xi32>
    %11 = arith.addi %4, %10 : vector<1x256xi32>
    %c16_i32 = arith.constant 16 : i32
    %12 = vector.broadcast %c16_i32 : i32 to vector<1x256xi32>
    %13 = arith.cmpi slt, %11, %12 : vector<1x256xi32>
    %14 = arith.andi %9, %13 : vector<1x256xi1>
    %cst_6 = arith.constant 0.000000e+00 : f32
    %15 = vector.shape_cast %14 : vector<1x256xi1> to vector<1x256xi1>
    %16 = vector.broadcast %15 : vector<1x256xi1> to vector<4x256xi1>
    %17 = vector.broadcast %cst_6 : f32 to vector<4x256xf32>
    %18 = arith.select %16, %5, %17 : vector<4x256xi1>, vector<4x256xf32>
    %19 = vector.extract_strided_slice %3 {offsets = [0, 1], sizes = [4, 256], strides = [1, 1]} : vector<4x290xf32> to vector<4x256xf32>
    %20 = vector.extract_strided_slice %3 {offsets = [0, 2], sizes = [4, 256], strides = [1, 1]} : vector<4x290xf32> to vector<4x256xf32>
    %c1_i32 = arith.constant 1 : i32
    %21 = vector.broadcast %c1_i32 : i32 to vector<1x256xi32>
    %22 = arith.addi %4, %21 : vector<1x256xi32>
    %c0_i32_7 = arith.constant 0 : i32
    %23 = vector.broadcast %c0_i32_7 : i32 to vector<1x256xi32>
    %24 = arith.cmpi sge, %22, %23 : vector<1x256xi32>
    %c1_i32_8 = arith.constant 1 : i32
    %25 = vector.broadcast %c1_i32_8 : i32 to vector<1x256xi32>
    %26 = arith.addi %4, %25 : vector<1x256xi32>
    %c16_i32_9 = arith.constant 16 : i32
    %27 = vector.broadcast %c16_i32_9 : i32 to vector<1x256xi32>
    %28 = arith.cmpi slt, %26, %27 : vector<1x256xi32>
    %29 = arith.andi %24, %28 : vector<1x256xi1>
    %cst_10 = arith.constant 0.000000e+00 : f32
    %30 = vector.shape_cast %29 : vector<1x256xi1> to vector<1x256xi1>
    %31 = vector.broadcast %30 : vector<1x256xi1> to vector<4x256xi1>
    %32 = vector.broadcast %cst_10 : f32 to vector<4x256xf32>
    %33 = arith.select %31, %20, %32 : vector<4x256xi1>, vector<4x256xf32>
    %34 = vector.extract_strided_slice %3 {offsets = [0, 16], sizes = [4, 256], strides = [1, 1]} : vector<4x290xf32> to vector<4x256xf32>
    %c-1_i32_11 = arith.constant -1 : i32
    %35 = vector.broadcast %c-1_i32_11 : i32 to vector<1x256xi32>
    %36 = arith.addi %4, %35 : vector<1x256xi32>
    %c0_i32_12 = arith.constant 0 : i32
    %37 = vector.broadcast %c0_i32_12 : i32 to vector<1x256xi32>
    %38 = arith.cmpi sge, %36, %37 : vector<1x256xi32>
    %c-1_i32_13 = arith.constant -1 : i32
    %39 = vector.broadcast %c-1_i32_13 : i32 to vector<1x256xi32>
    %40 = arith.addi %4, %39 : vector<1x256xi32>
    %c16_i32_14 = arith.constant 16 : i32
    %41 = vector.broadcast %c16_i32_14 : i32 to vector<1x256xi32>
    %42 = arith.cmpi slt, %40, %41 : vector<1x256xi32>
    %43 = arith.andi %38, %42 : vector<1x256xi1>
    %cst_15 = arith.constant 0.000000e+00 : f32
    %44 = vector.shape_cast %43 : vector<1x256xi1> to vector<1x256xi1>
    %45 = vector.broadcast %44 : vector<1x256xi1> to vector<4x256xi1>
    %46 = vector.broadcast %cst_15 : f32 to vector<4x256xf32>
    %47 = arith.select %45, %34, %46 : vector<4x256xi1>, vector<4x256xf32>
    %48 = vector.extract_strided_slice %3 {offsets = [0, 17], sizes = [4, 256], strides = [1, 1]} : vector<4x290xf32> to vector<4x256xf32>
    %49 = vector.extract_strided_slice %3 {offsets = [0, 18], sizes = [4, 256], strides = [1, 1]} : vector<4x290xf32> to vector<4x256xf32>
    %c1_i32_16 = arith.constant 1 : i32
    %50 = vector.broadcast %c1_i32_16 : i32 to vector<1x256xi32>
    %51 = arith.addi %4, %50 : vector<1x256xi32>
    %c0_i32_17 = arith.constant 0 : i32
    %52 = vector.broadcast %c0_i32_17 : i32 to vector<1x256xi32>
    %53 = arith.cmpi sge, %51, %52 : vector<1x256xi32>
    %c1_i32_18 = arith.constant 1 : i32
    %54 = vector.broadcast %c1_i32_18 : i32 to vector<1x256xi32>
    %55 = arith.addi %4, %54 : vector<1x256xi32>
    %c16_i32_19 = arith.constant 16 : i32
    %56 = vector.broadcast %c16_i32_19 : i32 to vector<1x256xi32>
    %57 = arith.cmpi slt, %55, %56 : vector<1x256xi32>
    %58 = arith.andi %53, %57 : vector<1x256xi1>
    %cst_20 = arith.constant 0.000000e+00 : f32
    %59 = vector.shape_cast %58 : vector<1x256xi1> to vector<1x256xi1>
    %60 = vector.broadcast %59 : vector<1x256xi1> to vector<4x256xi1>
    %61 = vector.broadcast %cst_20 : f32 to vector<4x256xf32>
    %62 = arith.select %60, %49, %61 : vector<4x256xi1>, vector<4x256xf32>
    %63 = vector.extract_strided_slice %3 {offsets = [0, 32], sizes = [4, 256], strides = [1, 1]} : vector<4x290xf32> to vector<4x256xf32>
    %c-1_i32_21 = arith.constant -1 : i32
    %64 = vector.broadcast %c-1_i32_21 : i32 to vector<1x256xi32>
    %65 = arith.addi %4, %64 : vector<1x256xi32>
    %c0_i32_22 = arith.constant 0 : i32
    %66 = vector.broadcast %c0_i32_22 : i32 to vector<1x256xi32>
    %67 = arith.cmpi sge, %65, %66 : vector<1x256xi32>
    %c-1_i32_23 = arith.constant -1 : i32
    %68 = vector.broadcast %c-1_i32_23 : i32 to vector<1x256xi32>
    %69 = arith.addi %4, %68 : vector<1x256xi32>
    %c16_i32_24 = arith.constant 16 : i32
    %70 = vector.broadcast %c16_i32_24 : i32 to vector<1x256xi32>
    %71 = arith.cmpi slt, %69, %70 : vector<1x256xi32>
    %72 = arith.andi %67, %71 : vector<1x256xi1>
    %cst_25 = arith.constant 0.000000e+00 : f32
    %73 = vector.shape_cast %72 : vector<1x256xi1> to vector<1x256xi1>
    %74 = vector.broadcast %73 : vector<1x256xi1> to vector<4x256xi1>
    %75 = vector.broadcast %cst_25 : f32 to vector<4x256xf32>
    %76 = arith.select %74, %63, %75 : vector<4x256xi1>, vector<4x256xf32>
    %77 = vector.extract_strided_slice %3 {offsets = [0, 33], sizes = [4, 256], strides = [1, 1]} : vector<4x290xf32> to vector<4x256xf32>
    %78 = vector.extract_strided_slice %3 {offsets = [0, 34], sizes = [4, 256], strides = [1, 1]} : vector<4x290xf32> to vector<4x256xf32>
    %c1_i32_26 = arith.constant 1 : i32
    %79 = vector.broadcast %c1_i32_26 : i32 to vector<1x256xi32>
    %80 = arith.addi %4, %79 : vector<1x256xi32>
    %c0_i32_27 = arith.constant 0 : i32
    %81 = vector.broadcast %c0_i32_27 : i32 to vector<1x256xi32>
    %82 = arith.cmpi sge, %80, %81 : vector<1x256xi32>
    %c1_i32_28 = arith.constant 1 : i32
    %83 = vector.broadcast %c1_i32_28 : i32 to vector<1x256xi32>
    %84 = arith.addi %4, %83 : vector<1x256xi32>
    %c16_i32_29 = arith.constant 16 : i32
    %85 = vector.broadcast %c16_i32_29 : i32 to vector<1x256xi32>
    %86 = arith.cmpi slt, %84, %85 : vector<1x256xi32>
    %87 = arith.andi %82, %86 : vector<1x256xi1>
    %cst_30 = arith.constant 0.000000e+00 : f32
    %88 = vector.shape_cast %87 : vector<1x256xi1> to vector<1x256xi1>
    %89 = vector.broadcast %88 : vector<1x256xi1> to vector<4x256xi1>
    %90 = vector.broadcast %cst_30 : f32 to vector<4x256xf32>
    %91 = arith.select %89, %78, %90 : vector<4x256xi1>, vector<4x256xf32>
    %92 = tpu.concatenate %18, %19, %33, %47, %48, %62, %76, %77, %91 in 0 : vector<4x256xf32>, vector<4x256xf32>, vector<4x256xf32>, vector<4x256xf32>, vector<4x256xf32>, vector<4x256xf32>, vector<4x256xf32>, vector<4x256xf32>, vector<4x256xf32> -> vector<36x256xf32>
    %93 = arith.truncf %92 : vector<36x256xf32> to vector<36x256xbf16>
    %c0_31 = arith.constant 0 : index
    %c0_32 = arith.constant 0 : index
    %94 = vector.load %arg4[%c0_31, %c0_32] : memref<16x36xbf16, #tpu.memory_space<vmem>>, vector<16x36xbf16>
    %cst_33 = arith.constant dense<0.000000e+00> : vector<16x256xf32>
    %95 = tpu.matmul %94, %93, %cst_33 {dimension_numbers = #tpu.dot_dimension_numbers<[1], [0], [0], [1], [0, 0, 1, 1], [], []>} : vector<16x36xbf16>, vector<36x256xbf16>, vector<16x256xf32> -> vector<16x256xf32>
    %c0_34 = arith.constant 0 : index
    %c0_35 = arith.constant 0 : index
    %96 = vector.load %arg5[%c0_34, %c0_35] : memref<16x1xf32, #tpu.memory_space<vmem>>, vector<16x1xf32>
    %97 = vector.broadcast %96 : vector<16x1xf32> to vector<16x256xf32>
    %98 = arith.addf %95, %97 : vector<16x256xf32>
    %99 = arith.truncf %98 : vector<16x256xf32> to vector<16x256xbf16>
    %c0_36 = arith.constant 0 : index
    %c0_37 = arith.constant 0 : index
    %c0_38 = arith.constant 0 : index
    %100 = vector.load %arg6[%c0_36, %c0_37, %c0_38] : memref<1x16x256xbf16, #tpu.memory_space<vmem>>, vector<1x16x256xbf16>
    %101 = vector.shape_cast %100 : vector<1x16x256xbf16> to vector<16x256xbf16>
    %102 = vector.shape_cast %99 : vector<16x256xbf16> to vector<1x16x256xbf16>
    tpu.vector_store %arg6[%c0_36, %c0_37, %c0_38], %102 {strides = array<i32>} : memref<1x16x256xbf16, #tpu.memory_space<vmem>>, vector<1x16x256xbf16>,
    return
  }
  func.func @transform_0(%arg0: i32, %arg1: i32) -> (i32, i32, i32, i32) {
    %c0_i32 = arith.constant 0 : i32
    %c0_i32_0 = arith.constant 0 : i32
    %c0_i32_1 = arith.constant 0 : i32
    return %arg0, %arg1, %c0_i32, %c0_i32_0 : i32, i32, i32, i32
  }
  func.func @transform_1(%arg0: i32, %arg1: i32) -> (i32, i32) {
    %c0_i32 = arith.constant 0 : i32
    %c0_i32_0 = arith.constant 0 : i32
    %c0_i32_1 = arith.constant 0 : i32
    return %c0_i32, %c0_i32_0 : i32, i32
  }
  func.func @transform_2(%arg0: i32, %arg1: i32) -> (i32, i32) {
    %c0_i32 = arith.constant 0 : i32
    %c0_i32_0 = arith.constant 0 : i32
    %c0_i32_1 = arith.constant 0 : i32
    return %c0_i32, %c0_i32_0 : i32, i32
  }
  func.func @transform_3(%arg0: i32, %arg1: i32) -> (i32, i32) {
    %c0_i32 = arith.constant 0 : i32
    %c0_i32_0 = arith.constant 0 : i32
    %c0_i32_1 = arith.constant 0 : i32
    return %c0_i32, %c0_i32_0 : i32, i32
  }
  func.func @transform_4(%arg0: i32, %arg1: i32) -> (i32, i32, i32) {
    %c0_i32 = arith.constant 0 : i32
    %c0_i32_0 = arith.constant 0 : i32
    return %arg0, %c0_i32, %arg1 : i32, i32, i32
  }
}

</mosaic_0001>

<bundles_post_ra>
// kernel: tile.9
= control target key start
LH: loop header
LB: loop body
LE: loop exit
PB: predicated region body
PF: predicated region fallthrough
CT: control target
= control target key end

     0   :  { %s7_s6 = smov 3  ;;  %s21_s9 = smov 3  ;;  %vm4_vm0 = vcmask 130048   ;;  %vm11_vm1 = vcmask 1048448   ;;  %vm18_vm2 = vcmask 917248   ;;  %vm25_vm3 = vcmask 786048   ;;  %s129_s0 = inlined_call_operand.vmem [shape: s32[16,16], index: 0, kind: input, shape index: {}]   ;;  %s130_s1 = inlined_call_operand.vmem [shape: s32[1,256], index: 1, kind: output, shape index: {}]  }
   0x1   :  { %v67_v0 = vld [vmem:[%s129_s0 + $0x7] ss:$8 sm:%s7_s6]   ;;  %s82_s10 = smov 112   ;;  %v69_v1 = vld [vmem:[%s129_s0 + $0x5] ss:$8 sm:%s21_s9]   ;;  %s83_s13 = smov 80  }
   0x2   :  { %9 = vrot.lane.b32.xlu0 %v67_v0, %s82_s10  ;;  %23 = vrot.lane.b32.xlu1 %v69_v1, %s83_s13  ;;  %s14_s14 = smov 3  ;;  %s28_s15 = smov 3  ;;  %vm32_vm4 = vcmask 654848   ;;  %vm39_vm5 = vcmask 523648   ;;  %vm46_vm6 = vcmask 392448   ;;  %vm53_vm7 = vcmask 261248  }
   0x3   :  { %s35_s16 = smov 3  ;;  %v68_v3 = vld [vmem:[%s129_s0 + $0x6] ss:$8 sm:%s14_s14]   ;;  %s84_s21 = smov 48   ;;  %v70_v4 = vld [vmem:[%s129_s0 + $0x4] ss:$8 sm:%s28_s15]  }
   0x4   :  { %v71_v2 = vld [vmem:[%s129_s0 + $0x3] ss:$8 sm:%s35_s16]   ;;  %s42_s24 = smov 3  ;;  %s85_s25 = smov 96  }
   0x5   :  { %37 = vrot.lane.b32.xlu2 %v71_v2, %s84_s21  ;;  %s86_s26 = smov 64   ;;  %s49_s27 = smov 3  ;;  %v72_v5 = vld [vmem:[%s129_s0 + $0x2] ss:$8 sm:%s42_s24]  }
   0x6   :  { %v73_v6 = vld [vmem:[%s129_s0 + $0x1] ss:$8 sm:%s49_s27]   ;;  %s87_s3 = smov 32   ;;  %s88_s4 = smov 16  }
   0x7   :  { %s2_s5 = smov 3 }
   0x8   :  { %v3_v7 = vld [vmem:[%s129_s0] ss:$8 sm:%s2_s5]  }
   0x9   :  { %5 = vst.msk [vmem:[#allocation0] ss:$8 sm:$0x3] %vm4_vm0, %v3_v7  }
   0xa   :  { %16 = vrot.lane.b32.xlu0 %v68_v3, %s85_s25  ;;  %30 = vrot.lane.b32.xlu1 %v70_v4, %s86_s26 }
   0xd   :  { %44 = vrot.lane.b32.xlu2 %v72_v5, %s87_s3 }
  0x12   :  { %51 = vrot.lane.b32.xlu0 %v73_v6, %s88_s4 }
  0x5f   :  { %v38_v8 = vpop.permute.xlu2 %37  }
  0x67   :  { %v45_v9 = vpop.permute.xlu2 %44  }
  0x74   :  { %v10_v10 = vpop.permute.xlu0 %9   ;;  %v24_v11 = vpop.permute.xlu1 %23  }
  0x75   :  { %12 = vst.msk [vmem:[#allocation0] ss:$8 sm:$0x3] %vm11_vm1, %v10_v10  }
  0x7c   :  { %v17_v12 = vpop.permute.xlu0 %16   ;;  %v31_v13 = vpop.permute.xlu1 %30  }
  0x7d   :  { %19 = vst.msk [vmem:[#allocation0] ss:$8 sm:$0x3] %vm18_vm2, %v17_v12  }
  0x7e   :  { %26 = vst.msk [vmem:[#allocation0] ss:$8 sm:$0x3] %vm25_vm3, %v24_v11  }
  0x7f   :  { %33 = vst.msk [vmem:[#allocation0] ss:$8 sm:$0x3] %vm32_vm4, %v31_v13  }
  0x80   :  { %40 = vst.msk [vmem:[#allocation0] ss:$8 sm:$0x3] %vm39_vm5, %v38_v8  }
  0x81   :  { %47 = vst.msk [vmem:[#allocation0] ss:$8 sm:$0x3] %vm46_vm6, %v45_v9  }
  0x84   :  { %v52_v14 = vpop.permute.xlu0 %51  }
  0x85   :  { %54 = vst.msk [vmem:[#allocation0] ss:$8 sm:$0x3] %vm53_vm7, %v52_v14  }
  0x8c   :  { %v57_v15 = vld [vmem:[#allocation0] sm:$0x1]  ;;  %v62_v16 = vld [vmem:[#allocation0 + $0x8] sm:$0x1] }
  0x8d   :  { %60 = vst [vmem:[%s130_s1] sm:$0x1] %v57_v15 }
  0x8e   :  { %74 = vst [vmem:[%s130_s1 + $0x1] sm:$0x1] %v62_v16 }

// kernel: pixel_shuffle_pack.1
= control target key start
LH: loop header
LB: loop body
LE: loop exit
PB: predicated region body
PF: predicated region fallthrough
CT: control target
= control target key end

     0   :  { %s715_s15 = smov 0   ;;  %s717_s16 = smov 0   ;;  %s844_s0 = inlined_call_operand.vmem [shape: f32[2,1,4,256], index: 0, kind: input, shape index: {}]   ;;  %s845_s1 = inlined_call_operand.vmem [shape: s32[1,256], index: 1, kind: input, shape index: {}]   ;;  %s846_s2 = inlined_call_operand.vmem [shape: bf16[16,36], index: 2, kind: input, shape index: {}]   ;;  %s847_s3 = inlined_call_operand.vmem [shape: f32[16,1], index: 3, kind: input, shape index: {}]   ;;  %s848_s4 = inlined_call_operand.vmem [shape: bf16[2,16,256], index: 4, kind: output, shape index: {}]  }
   0x1   :  { %s719_s17 = smov 0  }
   0x2 LB: > { %s26_s18 = sadd.s32 1, %s674_s16  ;;  %p559_p0 = scmp.ge.s32.totalorder %s678_s17, 1  ;;  %s678_s17 = sphi %s719_s17, %s14_s17   ;;  %s674_s16 = sphi %s717_s16, %s858_s16   ;;  %s670_s15 = sphi %s715_s15, %s857_s15  }
   0x3   : > { %p28_p1 = scmp.ge.s32.totalorder %s26_s18, 2  ;;  %p182_p2 = scmp.lt.s32.totalorder %s678_s17, 3 }
   0x5   : > { %s860_s18 = smov (%p28_p1, %s26_s18), 0  ;;  %p183_p3 = pnand %p559_p0, %p182_p2 }
   0x6   : > { %p216_p4 = scmp.lt.s32.totalorder (!%p183_p3), %s670_s15, 1  ;;  %s680_s23 = smov (!%p183_p3), 17  }
   0x7   : > { %186 = sbr.rel (%p183_p3) target bundleno = 445 (0x1bd), region = 36  ;;  %s682_s24 = smov (!%p183_p3), 110  }
   0x8   : > { %s683_s25 = smov (!%p183_p3), 94   ;;  %s684_s26 = smov (!%p183_p3), 96  }
   0x9   : > { %s685_s27 = smov (!%p183_p3), 111   ;;  %s686_s28 = smov (!%p183_p3), 112  }
   0xa   : > { %s687_s29 = smov (!%p183_p3), 126   ;;  %s688_s30 = smov (!%p183_p3), 95  }
   0xb   : > { %s689_s5 = smov (!%p183_p3), 127  }
   0xc   : > { %s862_s15 = smov (!%p216_p4, %s670_s15), 1  ;;  %v681_v4 = vmov 0   ;;  %vm245_vm0 = vcmask 138240   ;;  %v252_v16 = vld [vmem:[%s845_s1] sm:$0x3]  ;;  %vm333_vm4 = vcmask 769024  }
   0xd   : > { %s572_s19 = sshll.u32 %s862_s15, 3  ;;  %655 = vset.pattern.permute.xlu0 %v681_v4  ;;  %654 = vset.pattern.permute.xlu2 %v681_v4  ;;  %v264_v17 = vadd.s32 1, %v252_v16  ;;  %vm426_vm7 = vcmask 1041408   ;;  %v253_v39 = vadd.s32 4294967295, %v252_v16  ;;  %v406_v42 = vld [vmem:[%s847_s3 + $0x8] sm:$0xff]  ;;  %v405_v43 = vld [vmem:[%s847_s3] sm:$0xff] }
   0xe   : > { %s224_s22 = scalar_lea.vmem %s844_s0, %s572_s19  ;;  %vm307_vm11 = vcmask 900096   ;;  %vm320_vm12 = vcmask 785408   ;;  %vm366_vm13 = vcmask 908288   ;;  %vm294_vm14 = vcmask 916480   ;;  %s573_s14 = sshll.u32 %s862_s15, 4 }
   0xf   : > { %v236_v0 = vld [vmem:[%s224_s22] sm:$0xff]  ;;  %vm265_vm1 = vcmp.ge.s32.totalorder %v264_v17, 0  ;;  %vm266_vm2 = vcmp.lt.s32.totalorder %v264_v17, 16  ;;  %vm254_vm8 = vcmp.ge.s32.totalorder %v253_v39, 0  ;;  %vm255_vm9 = vcmp.lt.s32.totalorder %v253_v39, 16  ;;  %s233_s21 = scalar_lea.vmem %s848_s4, %s573_s14 }
  0x10   : > { %238 = vst [vmem:[#allocation1] ss:$2 sm:$0xff] %v236_v0  ;;  %vm267_vm3 = vmand %vm265_vm1, %vm266_vm2  ;;  %vm383_vm15 = vcmask 777216   ;;  %vm281_vm2 = vcmask 1031168  }
  0x11   : > { %v268_v19 = vsel %vm267_vm3, 1, %v681_v4  ;;  %vm256_vm10 = vmand %vm254_vm8, %vm255_vm9 }
  0x12   : > { %v269_v20 = vperm.slane %v268_v19, 0  ;;  %v270_v21 = vperm.slane %v268_v19, 1  ;;  %v257_v49 = vsel %vm256_vm10, 1, %v681_v4 }
  0x13   : > { %v258_v55 = vperm.slane %v257_v49, 0  ;;  %v259_v56 = vperm.slane %v257_v49, 1 }
  0x14   : > { %vm755_vm5 = vcmp.eq.s32.totalorder %v269_v20, 1  ;;  %vm759_vm6 = vcmp.eq.s32.totalorder %v270_v21, 1 }
  0x15   : > { %vm782_vm1 = vcmp.eq.s32.totalorder %v258_v55, 1  ;;  %vm796_vm3 = vcmp.eq.s32.totalorder %v259_v56, 1 }
  0x17   : > { %v239_v1 = vld.sshfl [vmem:[#allocation1] sm:$0xff pattern:$0x75316420]  ;;  %v240_v2 = vld.sshfl [vmem:[#allocation1 + $0x8] sm:$0xff pattern:$0x75316420] }
  0x18   : > { %v609_v3 = vpack.i.bf16 %v240_v2, %v239_v1 }
  0x1a   : > { %610 = vrot.lane.b32.xlu0 %v609_v3, %s680_s23 }
  0x8c   : > { %v611_v5 = vpop.permute.xlu0 %610 }
  0x8d   : > { %v613_v6 = vunpack.i.h.bf16 %v611_v5  ;;  %v612_v7 = vunpack.i.l.bf16 %v611_v5 }
  0x8f   : > { %v251_v8 = vsel %vm245_vm0, %v613_v6, 0.0  ;;  %v741_v9 = vsel %vm245_vm0, %v612_v7, %v613_v6  ;;  %v743_v10 = vsel %vm245_vm0, 0.0, %v612_v7  ;;  %vm388_vm0 = vcmask 1043456  }
  0x90   : > { %305 = vrot.lane.b32.xlu2 %v251_v8, %s682_s24  ;;  %331 = vrot.lane.b32.xlu1 %v251_v8, %s683_s25  ;;  %v614_v11 = vpack.i.bf16 %v741_v9, %v743_v10  ;;  %v340_v12 = vrot.slane %v743_v10, 4  ;;  %v341_v13 = vrot.slane %v741_v9, 4  ;;  %v342_v15 = vrot.slane %v251_v8, 4 }
  0x92   : > { %615 = vrot.lane.b32.xlu0 %v614_v11, %s683_s25  ;;  %v644_v14 = vpack.i.bf16 %v341_v13, %v340_v12 }
  0x98   : > { %625 = vrot.lane.b32.xlu2 %v614_v11, %s684_s26  ;;  %620 = vrot.lane.b32.xlu1 %v614_v11, %s682_s24 }
  0x9a   : > { %318 = vrot.lane.b32.xlu0 %v251_v8, %s684_s26 }
  0xa0   : > { %364 = vrot.lane.b32.xlu2 %v251_v8, %s685_s27  ;;  %630 = vrot.lane.b32.xlu1 %v614_v11, %s685_s27 }
  0xa2   : > { %292 = vrot.lane.b32.xlu0 %v251_v8, %s686_s28 }
  0xa8   : > { %635 = vrot.lane.b32.xlu2 %v614_v11, %s686_s28  ;;  %640 = vrot.lane.b32.xlu1 %v614_v11, %s687_s29 }
  0xaa   : > { %645 = vrot.lane.b32.xlu0 %v644_v14, %s688_s30 }
  0xb0   : > { %279 = vrot.lane.b32.xlu2 %v251_v8, %s687_s29  ;;  %381 = vrot.lane.b32.xlu1 %v342_v15, %s688_s30 }
  0xb2   : > { %650 = vrot.lane.b32.xlu0 %v644_v14, %s689_s5 }
  0xb8   : > { %347 = vrot.lane.b32.xlu1 %v342_v15, %s689_s5  ;;  %409 = vperm.xlu2 %654, %v405_v43  }
  0xba   : > { %414 = vperm.xlu0 %655, %v406_v42  }
  0xea   : > { %v306_v18 = vpop.permute.xlu2 %305 }
  0xf2   : > { %v753_v24 = vpop.permute.xlu2 %625 }
  0xf3   : > { %v628_v47 = vunpack.i.h.bf16 %v753_v24  ;;  %v627_v48 = vunpack.i.l.bf16 %v753_v24 }
  0xf5   : > { %v321_v58 = vsel %vm320_vm12, %v627_v48, %v628_v47 }
  0xf6   : > { %v325_v7 = vsel %vm782_vm1, %v321_v58, 0.0 }
  0xfa   : > { %v365_v40 = vpop.permute.xlu2 %364 }
 0x102   : > { %v332_v22 = vpop.permute.xlu1 %331  ;;  %v636_v51 = vpop.permute.xlu2 %635 }
 0x103   : > { %v638_v59 = vunpack.i.h.bf16 %v636_v51  ;;  %v637_v60 = vunpack.i.l.bf16 %v636_v51 }
 0x104   : > { %v616_v23 = vpop.permute.xlu0 %615 }
 0x105   : > { %v618_v25 = vunpack.i.h.bf16 %v616_v23  ;;  %v617_v26 = vunpack.i.l.bf16 %v616_v23  ;;  %v295_v12 = vsel %vm294_vm14, %v637_v60, %v638_v59 }
 0x106   : > { %v299_v23 = vsel %vm782_vm1, %v295_v12, 0.0 }
 0x107   : > { %v334_v29 = vsel %vm333_vm4, %v617_v26, %v618_v25  ;;  %v335_v30 = vsel %vm333_vm4, %v618_v25, %v332_v22  ;;  %vm349_vm4 = vcmask 1039360  }
 0x108   : > { %v338_v31 = vsel %vm755_vm5, %v334_v29, 0.0  ;;  %v339_v32 = vsel %vm759_vm6, %v335_v30, 0.0 }
 0x109   : > { %v401_v33 = vpack.c.bf16 %v338_v31, %v338_v31  ;;  %v402_v34 = vpack.c.bf16 %v339_v32, %v339_v32 }
 0x10a   : > { %v621_v35 = vpop.permute.xlu1 %620  ;;  %v280_v30 = vpop.permute.xlu2 %279 }
 0x10b   : > { %v428_v36 = vsel %vm426_vm7, %v401_v33, 0  ;;  %v431_v37 = vsel %vm426_vm7, %v402_v34, 0  ;;  %v623_v44 = vunpack.i.h.bf16 %v621_v35  ;;  %v622_v45 = vunpack.i.l.bf16 %v621_v35 }
 0x10c   : > { %v319_v38 = vpop.permute.xlu0 %318  ;;  %438 = vmatpush.bf16.msra.mxu0 %v428_v36  ;;  %452 = vmatpush.bf16.msra.mxu1 %v431_v37  ;;  %v356_v35 = vrot.slane %v299_v23, 4 }
 0x10d   : > { %v308_v50 = vsel %vm307_vm11, %v622_v45, %v623_v44  ;;  %v309_v61 = vsel %vm307_vm11, %v623_v44, %v306_v18  ;;  %v322_v11 = vsel %vm320_vm12, %v628_v47, %v319_v38  ;;  %v262_v38 = vsel %vm782_vm1, %v743_v10, 0.0  ;;  %v574_v45 = vld [vmem:[%s846_s2] sm:$0xff] }
 0x10e   : > { %v312_v57 = vsel %vm755_vm5, %v308_v50, 0.0  ;;  %v313_v6 = vsel %vm759_vm6, %v309_v61, 0.0  ;;  %v326_v21 = vsel %vm796_vm3, %v322_v11, 0.0  ;;  %v263_v10 = vsel %vm796_vm3, %v741_v9, 0.0 }
 0x10f   : > { %v373_v2 = vrot.slane %v312_v57, 4  ;;  %v374_v18 = vrot.slane %v313_v6, 4 }
 0x112   : > { %v631_v41 = vpop.permute.xlu1 %630  ;;  %v410_v50 = vpop.permute.xlu2 %409 }
 0x113   : > { %v633_v52 = vunpack.i.h.bf16 %v631_v41  ;;  %v632_v53 = vunpack.i.l.bf16 %v631_v41 }
 0x114   : > { %v293_v46 = vpop.permute.xlu0 %292 }
 0x115   : > { %v367_v1 = vsel %vm366_vm13, %v632_v53, %v633_v52  ;;  %v368_v16 = vsel %vm366_vm13, %v633_v52, %v365_v40  ;;  %v296_v24 = vsel %vm294_vm14, %v638_v59, %v293_v46 }
 0x116   : > { %v393_v13 = vsel %vm388_vm0, %v367_v1, %v373_v2  ;;  %v394_v26 = vsel %vm388_vm0, %v368_v16, %v374_v18  ;;  %v300_v37 = vsel %vm796_vm3, %v296_v24, 0.0 }
 0x117   : > { %v357_v43 = vrot.slane %v300_v37, 4 }
 0x11a   : > { %v641_v54 = vpop.permute.xlu1 %640 }
 0x11b   : > { %v643_v3 = vunpack.i.h.bf16 %v641_v54  ;;  %v642_v4 = vunpack.i.l.bf16 %v641_v54 }
 0x11c   : > { %v646_v62 = vpop.permute.xlu0 %645 }
 0x11d   : > { %v648_v63 = vunpack.i.h.bf16 %v646_v62  ;;  %v647_v0 = vunpack.i.l.bf16 %v646_v62  ;;  %v282_v20 = vsel %vm281_vm2, %v642_v4, %v643_v3  ;;  %v283_v36 = vsel %vm281_vm2, %v643_v3, %v280_v30 }
 0x11e   : > { %v286_v34 = vsel %vm755_vm5, %v282_v20, 0.0  ;;  %v287_v27 = vsel %vm759_vm6, %v283_v36, 0.0  ;;  %vm422_vm5 = vcmask 293888  }
 0x11f   : > { %v384_v8 = vsel %vm383_vm15, %v647_v0, %v648_v63  ;;  %v391_v41 = vsel %vm388_vm0, %v286_v34, %v356_v35  ;;  %v392_v28 = vsel %vm388_vm0, %v287_v27, %v357_v43 }
 0x120   : > { %v395_v14 = vsel %vm388_vm0, %v325_v7, %v384_v8 }
 0x121   : > { %v399_v15 = vpack.c.bf16 %v395_v14, %v393_v13 }
 0x122   : > { %v382_v19 = vpop.permute.xlu1 %381 }
 0x123   : > { %v385_v22 = vsel %vm383_vm15, %v648_v63, %v382_v19  ;;  %439 = vmatpush.bf16.msra.mxu0 %v399_v15 }
 0x124   : > { %v651_v25 = vpop.permute.xlu0 %650  ;;  %v396_v29 = vsel %vm388_vm0, %v326_v21, %v385_v22 }
 0x125   : > { %v653_v31 = vunpack.i.h.bf16 %v651_v25  ;;  %v652_v32 = vunpack.i.l.bf16 %v651_v25  ;;  %v400_v33 = vpack.c.bf16 %v396_v29, %v394_v26 }
 0x127   : > { %453 = vmatpush.bf16.msra.mxu1 %v400_v33  ;;  %v350_v39 = vsel %vm349_vm4, %v652_v32, %v653_v31 }
 0x128   : > { %v389_v40 = vsel %vm388_vm0, %v262_v38, %v350_v39 }
 0x129   : > { %v397_v42 = vpack.c.bf16 %v391_v41, %v389_v40 }
 0x12a   : > { %v348_v44 = vpop.permute.xlu1 %347 }
 0x12b   : > { %v351_v46 = vsel %vm349_vm4, %v653_v31, %v348_v44  ;;  %440 = vmatpush.bf16.msra.mxu0 %v397_v42 }
 0x12c   : > { %v390_v47 = vsel %vm388_vm0, %v263_v10, %v351_v46  ;;  %v415_v9 = vpop.permute.xlu0 %414 }
 0x12d   : > { %v398_v48 = vpack.c.bf16 %v392_v28, %v390_v47 }
 0x12e   : > { %568 = vmatmul.msk.bf16.vlgmr.msra.gmra.mxu0 %vm422_vm5, %v574_v45 }
 0x12f   : > { %454 = vmatpush.bf16.msra.mxu1 %v398_v48 }
 0x132   : > { %569 = vmatmul.msk.bf16.vlgmr.msra.gmra.mxu1 %vm422_vm5, %v574_v45 }
 0x1ab   : > { %v442_v49 = vpop.f32.mrf.mxu0 }
 0x1ac   : > { %v443_v51 = vadd.f32 %v442_v49, %v410_v50 }
 0x1af   : > { %v456_v52 = vpop.f32.mrf.mxu1 }
 0x1b0   : > { %v457_v53 = vadd.f32 %v456_v52, %v410_v50 }
 0x1b2   : > { %v461_v54 = vpack.c.bf16 %v457_v53, %v443_v51 }
 0x1b3   : > { %v444_v55 = vpop.f32.mrf.mxu0 }
 0x1b4   : > { %463 = vst [vmem:[%s233_s21] sm:$0xff] %v461_v54  ;;  %v445_v57 = vadd.f32 %v444_v55, %v415_v9 }
 0x1b7   : > { %v458_v56 = vpop.f32.mrf.mxu1 }
 0x1b8   : > { %v459_v58 = vadd.f32 %v458_v56, %v415_v9 }
 0x1ba   : > { %v462_v59 = vpack.c.bf16 %v459_v58, %v445_v57 }
 0x1bc   : > { %464 = vst [vmem:[%s233_s21 + $0x8] sm:$0xff] %v462_v59 }
 0x1bd PF: > { %s14_s17 = sadd.s32 1, %s678_s17   ;;  %s857_s15 = smov %s674_s16 }
 0x1be   : > { %p11_p5 = scmp.ge.s32.totalorder %s14_s17, 4   ;;  %s858_s16 = smov %s860_s18 }
 0x1c0   :  { %13 = sbr.rel (!%p11_p5) target bundleno = 2 (0x2), region = 66 }

</bundles_post_ra>
